<compile_context>
chip_gen: v7x
topology: tpu7x:2x2x1
jax: 0.10.0
libtpu: 0.0.40
codegen_flags: <defaults>
</compile_context>

<pallas_src>
import jax
import jax.numpy as jnp
from jax.experimental import pallas as pl
from jax.experimental.pallas import tpu as pltpu


def _round_up(x, m):
    return ((x + m - 1) // m) * m


_SINGLE_BUFFER_MIN_BYTES = 2 * 1024 * 1024  # below this, double-buffer waste is noise


def _buf_count(nbytes):
    return 1 if nbytes >= _SINGLE_BUFFER_MIN_BYTES else 2


def _const_block_spec(shape, index_map, nbytes):
    # Constant-index block: never re-fetched across the grid, so a second
    # pipeline buffer is pure VMEM waste once the tile is big (matters under
    # v7x's 64 MiB/TC budget).
    if nbytes >= _SINGLE_BUFFER_MIN_BYTES:
        return pl.BlockSpec(shape, index_map, pipeline_mode=pl.Buffered(1))
    return pl.BlockSpec(shape, index_map)


def _tpu_vmem_bytes():
    try:
        info = pltpu.get_tpu_info()
        for attr in ("vmem_capacity_bytes", "vmem_bytes", "vmem_size_bytes"):
            v = getattr(info, attr, None)
            if v:
                return int(v)
    except Exception:
        pass
    return 64 * 1024 * 1024  # conservative default: v7x per-TensorCore VMEM


def _vmem_budgets():
    phys = _tpu_vmem_bytes()
    # Resident tiles (incl. pipeline buffers) must fit comfortably below the
    # physical VMEM: ~52 MiB on v7x (64 MiB/TC), ~100 MiB on v5e/v6e (128 MiB).
    fit_budget = max(min(phys - (12 << 20), 100 << 20), 24 << 20)
    # Raise the scoped-VMEM limit whenever we exceed v5e's ~16 MiB default.
    raise_threshold = 12 << 20
    return fit_budget, raise_threshold


def _vmem_limit(need_bytes, fit_budget, raise_threshold):
    if need_bytes <= raise_threshold:
        return None  # the per-chip scoped default (16/32 MiB) is enough
    limit = int(need_bytes * 1.25) + (2 << 20)
    return max(min(limit, fit_budget + (8 << 20)), 32 << 20)


def _pick_out_tiling(out_features):
    out_pad = _round_up(out_features, 128)  # lane-dense (unmasked vst) output
    tn = next(t for t in (512, 384, 256, 128) if out_pad % t == 0)
    if tn == 128 and out_pad >= 1024:
        # Avoid exploding the N-tile count: accept a slightly larger tile, or
        # re-pad out_pad to a multiple of 256.
        for t in (1024, 896, 768, 640):
            if out_pad % t == 0:
                return out_pad, t
        out_pad = _round_up(out_pad, 256)
        tn = 256
    return out_pad, tn


def _pick_tm(m, dtype):
    base = 256 if dtype == jnp.bfloat16 else 128
    tm = 2 * base if m >= 2 * base else base  # larger M tiles amortize grid-step cost
    # Don't pad tiny batches (common for MoE per-expert slices) up to a full tile.
    tm = min(tm, _round_up(max(m, 1), 16 if dtype == jnp.bfloat16 else 8))
    return tm


# ----------------------------- kernels --------------------------------------

def _make_merged_kernel(has_bias):
    # Single dense matmul; grid = (N tiles, M tiles), weight tile resident
    # across the inner M sweep.
    def kernel(x_ref, w_ref, *rest):
        if has_bias:
            b_ref, o_ref = rest
        else:
            (o_ref,) = rest
            b_ref = None
        y = jnp.dot(x_ref[...], w_ref[...], preferred_element_type=jnp.float32)
        if has_bias:
            y = y + b_ref[...]
        o_ref[...] = y.astype(o_ref.dtype)
    return kernel


def _make_lowrank_kernel(has_bias):
    # Grid = (M tiles [parallel], N tiles [arbitrary]).  z = x @ svh^T is
    # computed once per M tile (at n == 0) into VMEM scratch and reused for all
    # N tiles, so the first matmul and the x DMA are not repeated out_pad/tn
    # times.
    def kernel(x_ref, svh_t_ref, u_t_ref, *rest):
        if has_bias:
            b_ref, o_ref, z_ref = rest
        else:
            o_ref, z_ref = rest
            b_ref = None

        @pl.when(pl.program_id(1) == 0)
        def _():
            z = jnp.dot(x_ref[...], svh_t_ref[...],
                        preferred_element_type=jnp.float32)
            z_ref[...] = z.astype(z_ref.dtype)

        y = jnp.dot(z_ref[...], u_t_ref[...], preferred_element_type=jnp.float32)
        if has_bias:
            y = y + b_ref[...]
        o_ref[...] = y.astype(o_ref.dtype)
    return kernel


def _make_lowrank_ktiled_kernel(has_bias):
    # Grid = (M tiles [parallel], K_in tiles [arbitrary]).  The contraction over
    # in_features is tiled with an f32 accumulator so neither (tm, in) nor
    # (in, k) must sit fully in VMEM (needed on v7x for very large in_features).
    # The second matmul + bias + store run once, at the last K_in step, over the
    # full lane-dense out_pad width.
    def kernel(x_ref, svh_t_ref, u_t_ref, *rest):
        if has_bias:
            b_ref, o_ref, acc_ref = rest
        else:
            o_ref, acc_ref = rest
            b_ref = None

        kin = pl.program_id(1)

        @pl.when(kin == 0)
        def _():
            acc_ref[...] = jnp.zeros_like(acc_ref)

        acc_ref[...] += jnp.dot(x_ref[...], svh_t_ref[...],
                                preferred_element_type=jnp.float32)

        @pl.when(kin == pl.num_programs(1) - 1)
        def _():
            z = acc_ref[...].astype(x_ref.dtype)
            y = jnp.dot(z, u_t_ref[...], preferred_element_type=jnp.float32)
            if has_bias:
                y = y + b_ref[...]
            o_ref[...] = y.astype(o_ref.dtype)
    return kernel


# ----------------------------- weight prep -----------------------------------

def prepare_smile_expert(u, svh, bias=None, *, compute_dtype=None):
    """One-time weight layout for SmileLinearExpert (hoist out of the forward).

    Transposes / pads the low-rank factors (and fuses them into one dense
    weight only when that is strictly cheaper), so the per-forward call does no
    weight-side HBM work.
    """
    out_features, k = u.shape
    k2, in_features = svh.shape
    assert k2 == k and k >= 1
    if compute_dtype is None:
        compute_dtype = u.dtype
    isz = jnp.dtype(compute_dtype).itemsize

    out_pad, tn = _pick_out_tiling(out_features)
    k_pad = _round_up(k, 128)

    b2d = None
    if bias is not None:
        b2d = bias.reshape(1, out_features).astype(jnp.float32)  # add in f32
        if out_pad != out_features:
            b2d = jnp.pad(b2d, ((0, 0), (0, out_pad - out_features)))

    # Merge gate on actual cost: dense MXU work / weight bytes must not exceed
    # the low-rank form, and the fused weight must be genuinely small.
    dense_cost = in_features * out_pad
    lowrank_cost = k_pad * (in_features + out_pad)
    fused_bytes = in_features * out_pad * isz
    if dense_cost <= lowrank_cost and fused_bytes <= (8 << 20):
        w = jnp.dot(svh.astype(jnp.float32).T, u.astype(jnp.float32).T,
                    precision=jax.lax.Precision.HIGHEST)
        if out_pad != out_features:
            w = jnp.pad(w, ((0, 0), (0, out_pad - out_features)))
        return dict(mode="merged", w=w.astype(compute_dtype), b2d=b2d,
                    in_features=in_features, out_features=out_features,
                    out_pad=out_pad, k_pad=k_pad, tn=tn)

    svh_t = svh.T.astype(compute_dtype)            # (in, k)
    u_t = u.T.astype(compute_dtype)                # (k, out)
    if k_pad != k:
        svh_t = jnp.pad(svh_t, ((0, 0), (0, k_pad - k)))
        u_t = jnp.pad(u_t, ((0, k_pad - k), (0, 0)))
    if out_pad != out_features:
        u_t = jnp.pad(u_t, ((0, 0), (0, out_pad - out_features)))
    return dict(mode="lowrank", svh_t=svh_t, u_t=u_t, b2d=b2d,
                in_features=in_features, out_features=out_features,
                out_pad=out_pad, k_pad=k_pad, tn=tn)


# ----------------------------- forward ---------------------------------------

def smile_linear_expert_apply(x, prepared, *, tm=None, k_tile_in=None):
    """Apply a prepared SmileLinearExpert: y = (x @ svh^T) @ u^T + bias."""
    in_features = prepared["in_features"]
    out_features = prepared["out_features"]
    out_pad = prepared["out_pad"]
    tn = prepared["tn"]
    b2d = prepared["b2d"]
    has_bias = b2d is not None
    assert x.shape[-1] == in_features

    lead_shape = x.shape[:-1]
    m = 1
    for d in lead_shape:
        m *= d
    x2d = x.reshape(m, in_features)
    dtype = x2d.dtype
    isz = jnp.dtype(dtype).itemsize

    if tm is None:
        tm = _pick_tm(m, dtype)
    fit_budget, raise_threshold = _vmem_budgets()

    if prepared["mode"] == "merged":
        w = prepared["w"]
        if w.dtype != dtype:
            w = w.astype(dtype)  # only on dtype mismatch; normally prepared once
        m_pad = _round_up(m, tm)
        if m_pad != m:
            x2d = jnp.pad(x2d, ((0, m_pad - m), (0, 0)))
        # N outer, M inner: the (in, tn) weight tile stays resident across the
        # M sweep (weight >> activations for MoE-sized m).
        grid = (out_pad // tn, m_pad // tm)
        in_specs = [
            pl.BlockSpec((tm, in_features), lambda n, mi: (mi, 0)),
            pl.BlockSpec((in_features, tn), lambda n, mi: (0, n)),
        ]
        operands = [x2d, w]
        if has_bias:
            in_specs.append(pl.BlockSpec((1, tn), lambda n, mi: (0, n)))
            operands.append(b2d)
        out_spec = pl.BlockSpec((tm, tn), lambda n, mi: (mi, n))
        kernel = _make_merged_kernel(has_bias)
        scratch_shapes = []
        semantics = ("parallel", "parallel")
        flops = 2.0 * m_pad * in_features * out_pad
        bytes_accessed = (m_pad * in_features * isz * grid[0]   # x re-fetched per N tile
                          + in_features * out_pad * isz
                          + (out_pad * 4 if has_bias else 0)
                          + m_pad * out_pad * isz)
        vmem_need = (2 * (tm * in_features + tm * tn) * isz
                     + 2 * in_features * tn * isz
                     + (2 * tn * 4 if has_bias else 0))
    else:
        svh_t = prepared["svh_t"]
        u_t = prepared["u_t"]
        if svh_t.dtype != dtype:
            svh_t = svh_t.astype(dtype)
        if u_t.dtype != dtype:
            u_t = u_t.astype(dtype)
        k_pad = prepared["k_pad"]

        def zcache_need(tm_):
            return (2 * tm_ * in_features * isz
                    + _buf_count(in_features * k_pad * isz) * in_features * k_pad * isz
                    + 2 * k_pad * tn * isz
                    + 2 * tm_ * tn * isz
                    + tm_ * k_pad * isz
                    + (2 * tn * 4 if has_bias else 0))

        def ktiled_need(tm_, tk_):
            return (2 * tm_ * tk_ * isz
                    + 2 * tk_ * k_pad * isz
                    + _buf_count(k_pad * out_pad * isz) * k_pad * out_pad * isz
                    + 2 * tm_ * out_pad * isz
                    + tm_ * k_pad * 4
                    + (out_pad * 4 if has_bias else 0))

        use_ktiled = k_tile_in is not None
        if not use_ktiled and zcache_need(tm) > fit_budget and in_features >= 1024:
            use_ktiled, k_tile_in = True, 512  # full-contraction tiles don't fit (v7x)

        if not use_ktiled:
            while zcache_need(tm) > fit_budget and tm > 16:
                tm //= 2
            m_pad = _round_up(m, tm)
            if m_pad != m:
                x2d = jnp.pad(x2d, ((0, m_pad - m), (0, 0)))
            # M outer (parallel/megacore-safe), N inner (arbitrary, carries z scratch).
            grid = (m_pad // tm, out_pad // tn)
            svh_bytes = in_features * k_pad * isz
            in_specs = [
                pl.BlockSpec((tm, in_features), lambda mi, n: (mi, 0)),
                _const_block_spec((in_features, k_pad), lambda mi, n: (0, 0), svh_bytes),
                pl.BlockSpec((k_pad, tn), lambda mi, n: (0, n)),
            ]
            operands = [x2d, svh_t, u_t]
            if has_bias:
                in_specs.append(pl.BlockSpec((1, tn), lambda mi, n: (0, n)))
                operands.append(b2d)
            out_spec = pl.BlockSpec((tm, tn), lambda mi, n: (mi, n))
            kernel = _make_lowrank_kernel(has_bias)
            scratch_shapes = [pltpu.VMEM((tm, k_pad), dtype)]
            semantics = ("parallel", "arbitrary")
            m_tiles = grid[0]
            flops = 2.0 * m_pad * k_pad * (in_features + out_pad)
            bytes_accessed = (m_pad * in_features * isz
                              + in_features * k_pad * isz
                              + k_pad * out_pad * isz * m_tiles   # u_t re-fetched per M tile
                              + (out_pad * 4 * m_tiles if has_bias else 0)
                              + m_pad * out_pad * isz)
            vmem_need = zcache_need(tm)
        else:
            tk = max(128, _round_up(min(int(k_tile_in), in_features), 128))
            in_pad = _round_up(in_features, tk)
            # TODO(synk): for production MoE serving, pre-pad svh_t / x along
            # in_features in prepare_smile_expert so this per-call pad vanishes.
            if in_pad != in_features:
                x2d = jnp.pad(x2d, ((0, 0), (0, in_pad - in_features)))
                svh_t = jnp.pad(svh_t, ((0, in_pad - in_features), (0, 0)))
            while ktiled_need(tm, tk) > fit_budget and tm > 16:
                tm //= 2
            m_pad = _round_up(m, tm)
            if m_pad != m:
                x2d = jnp.pad(x2d, ((0, m_pad - m), (0, 0)))
            # M outer (parallel), K_in inner (arbitrary, carries the accumulator).
            grid = (m_pad // tm, in_pad // tk)
            u_bytes = k_pad * out_pad * isz
            in_specs = [
                pl.BlockSpec((tm, tk), lambda mi, kin: (mi, kin)),
                pl.BlockSpec((tk, k_pad), lambda mi, kin: (kin, 0)),
                _const_block_spec((k_pad, out_pad), lambda mi, kin: (0, 0), u_bytes),
            ]
            operands = [x2d, svh_t, u_t]
            if has_bias:
                in_specs.append(
                    _const_block_spec((1, out_pad), lambda mi, kin: (0, 0), out_pad * 4))
                operands.append(b2d)
            out_spec = pl.BlockSpec((tm, out_pad), lambda mi, kin: (mi, 0))
            kernel = _make_lowrank_ktiled_kernel(has_bias)
            scratch_shapes = [pltpu.VMEM((tm, k_pad), jnp.float32)]
            semantics = ("parallel", "arbitrary")
            m_tiles = grid[0]
            flops = 2.0 * m_pad * k_pad * (in_pad + out_pad)
            bytes_accessed = (m_pad * in_pad * isz
                              + in_pad * k_pad * isz * m_tiles  # svh streamed per M tile
                              + k_pad * out_pad * isz
                              + (out_pad * 4 if has_bias else 0)
                              + m_pad * out_pad * isz)
            vmem_need = ktiled_need(tm, tk)

    cost = pl.CostEstimate(flops=int(flops), transcendentals=0,
                           bytes_accessed=int(bytes_accessed))
    vmem_limit = _vmem_limit(vmem_need, fit_budget, raise_threshold)

    out2d = pl.pallas_call(
        kernel,
        out_shape=jax.ShapeDtypeStruct((m_pad, out_pad), dtype),
        grid_spec=pltpu.PrefetchScalarGridSpec(
            num_scalar_prefetch=0,
            grid=grid,
            in_specs=in_specs,
            out_specs=out_spec,
            scratch_shapes=scratch_shapes,
        ),
        compiler_params=pltpu.CompilerParams(
            dimension_semantics=semantics,
            vmem_limit_bytes=vmem_limit,
        ),
        cost_estimate=cost,
    )(*operands)

    out2d = out2d[:m, :out_features]
    return out2d.reshape(*lead_shape, out_features)


def smile_linear_expert(x, u, svh, bias=None, **kwargs):
    """Convenience wrapper: y = (x @ svh^T) @ u^T + bias.

    For repeated forwards, hoist `prepare_smile_expert` (weight transpose /
    pad / fuse) out of the loop and call `smile_linear_expert_apply` directly.
    """
    prepared = prepare_smile_expert(u, svh, bias, compute_dtype=x.dtype)
    return smile_linear_expert_apply(x, prepared, **kwargs)


# ----------------------------- tests ------------------------------------------

if __name__ == "__main__":
    keys = jax.random.split(jax.random.PRNGKey(0), 16)
    hi = jax.lax.Precision.HIGHEST

    def ref_forward(x, u, svh, bias):
        xf = x.astype(jnp.float32)
        y = jnp.dot(jnp.dot(xf, svh.astype(jnp.float32).T, precision=hi),
                    u.astype(jnp.float32).T, precision=hi)
        if bias is not None:
            y = y + bias.astype(jnp.float32)
        return y

    # Case 1: tiny expert (in=64, out=96, k=16), f32, bias.
    # Cost gate selects the merged single-matmul path (dense <= low-rank work).
    x1 = jax.random.normal(keys[0], (2, 8, 64), dtype=jnp.float32)
    u1 = jax.random.normal(keys[1], (96, 16), dtype=jnp.float32) * 0.1
    svh1 = jax.random.normal(keys[2], (16, 64), dtype=jnp.float32) * 0.1
    b1 = jax.random.normal(keys[3], (96,), dtype=jnp.float32) * 0.01
    y1 = jax.block_until_ready(smile_linear_expert(x1, u1, svh1, b1))
    r1 = ref_forward(x1, u1, svh1, b1)
    assert y1.shape == (2, 8, 96)
    assert jnp.allclose(y1, r1, atol=2e-4, rtol=2e-4), float(jnp.max(jnp.abs(y1 - r1)))

    # Case 2: k=128, in=256, out=768, f32, no bias -> low-rank path: z = x @ svh^T
    # cached in VMEM and reused across 2 N tiles (tn=384), 2 M tiles.
    # Weight layout is prepared once (hoisted) and reused.
    x2 = jax.random.normal(keys[4], (4, 40, 256), dtype=jnp.float32)
    u2 = jax.random.normal(keys[5], (768, 128), dtype=jnp.float32) * 0.05
    svh2 = jax.random.normal(keys[6], (128, 256), dtype=jnp.float32) * 0.05
    prep2 = prepare_smile_expert(u2, svh2, None, compute_dtype=jnp.float32)
    assert prep2["mode"] == "lowrank"
    y2 = jax.block_until_ready(smile_linear_expert_apply(x2, prep2))
    r2 = ref_forward(x2, u2, svh2, None)
    assert y2.shape == (4, 40, 768)
    assert jnp.allclose(y2, r2, atol=2e-4, rtol=2e-4), float(jnp.max(jnp.abs(y2 - r2)))

    # Case 3: bf16, bias, K-tiled contraction over in_features (forced with a
    # small chunk so the large-in_features / v7x path is exercised here too).
    x3 = jax.random.normal(keys[7], (2, 24, 512), dtype=jnp.bfloat16)
    u3 = (jax.random.normal(keys[8], (256, 128), dtype=jnp.float32) * 0.05).astype(jnp.bfloat16)
    svh3 = (jax.random.normal(keys[9], (128, 512), dtype=jnp.float32) * 0.05).astype(jnp.bfloat16)
    b3 = (jax.random.normal(keys[10], (256,), dtype=jnp.float32) * 0.01).astype(jnp.bfloat16)
    y3 = jax.block_until_ready(smile_linear_expert(x3, u3, svh3, b3, k_tile_in=128))
    r3 = ref_forward(x3, u3, svh3, b3)
    assert y3.shape == (2, 24, 256)
    assert jnp.allclose(y3.astype(jnp.float32), r3, atol=3e-2, rtol=3e-2), \
        float(jnp.max(jnp.abs(y3.astype(jnp.float32) - r3)))

    # Case 4: bf16 low-rank (z-cache) path with bias — checks the bf16
    # intermediate-rounding tolerance the review asked for.
    x4 = jax.random.normal(keys[11], (2, 8, 256), dtype=jnp.bfloat16)
    u4 = (jax.random.normal(keys[12], (384, 128), dtype=jnp.float32) * 0.05).astype(jnp.bfloat16)
    svh4 = (jax.random.normal(keys[13], (128, 256), dtype=jnp.float32) * 0.05).astype(jnp.bfloat16)
    b4 = (jax.random.normal(keys[14], (384,), dtype=jnp.float32) * 0.01).astype(jnp.bfloat16)
    y4 = jax.block_until_ready(smile_linear_expert(x4, u4, svh4, b4))
    r4 = ref_forward(x4, u4, svh4, b4)
    assert y4.shape == (2, 8, 384)
    assert jnp.allclose(y4.astype(jnp.float32), r4, atol=3e-2, rtol=3e-2), \
        float(jnp.max(jnp.abs(y4.astype(jnp.float32) - r4)))

    print("KERNEL_OK")
</pallas_src>

<mosaic_0001>
module attributes {stable_mosaic.version = 11 : i64} {
  func.func @kernel(%arg0: i32, %arg1: i32, %arg2: memref<16x64xf32, #tpu.memory_space<vmem>>, %arg3: memref<64x128xf32, #tpu.memory_space<vmem>>, %arg4: memref<1x128xf32, #tpu.memory_space<vmem>>, %arg5: memref<16x128xf32, #tpu.memory_space<vmem>>) attributes {dimension_semantics = [#tpu.dimension_semantics<parallel>, #tpu.dimension_semantics<parallel>], iteration_bounds = array<i64: 1, 1>, scalar_prefetch = 0 : i64, scratch_operands = 0 : i64, tpu.core_type = #tpu.core_type<tc>, window_params = [{transform_indices = @transform_0, window_bounds = array<i64: 16, 64>}, {transform_indices = @transform_1, window_bounds = array<i64: 64, 128>}, {transform_indices = @transform_2, window_bounds = array<i64: 1, 128>}, {transform_indices = @transform_3, window_bounds = array<i64: 16, 128>}]} {
    %c0 = arith.constant 0 : index
    %c0_0 = arith.constant 0 : index
    %0 = vector.load %arg2[%c0, %c0_0] : memref<16x64xf32, #tpu.memory_space<vmem>>, vector<16x64xf32>
    %c0_1 = arith.constant 0 : index
    %c0_2 = arith.constant 0 : index
    %1 = vector.load %arg3[%c0_1, %c0_2] : memref<64x128xf32, #tpu.memory_space<vmem>>, vector<64x128xf32>
    %cst = arith.constant dense<0.000000e+00> : vector<16x128xf32>
    %2 = tpu.matmul %0, %1, %cst {dimension_numbers = #tpu.dot_dimension_numbers<[1], [0], [0], [1], [0, 0, 1, 1], [], []>} : vector<16x64xf32>, vector<64x128xf32>, vector<16x128xf32> -> vector<16x128xf32>
    %c0_3 = arith.constant 0 : index
    %c0_4 = arith.constant 0 : index
    %3 = vector.load %arg4[%c0_3, %c0_4] : memref<1x128xf32, #tpu.memory_space<vmem>>, vector<1x128xf32>
    %4 = vector.broadcast %3 : vector<1x128xf32> to vector<16x128xf32>
    %5 = arith.addf %2, %4 : vector<16x128xf32>
    %c0_5 = arith.constant 0 : index
    %c0_6 = arith.constant 0 : index
    %6 = vector.load %arg5[%c0_5, %c0_6] : memref<16x128xf32, #tpu.memory_space<vmem>>, vector<16x128xf32>
    tpu.vector_store %arg5[%c0_5, %c0_6], %5 {strides = array<i32>} : memref<16x128xf32, #tpu.memory_space<vmem>>, vector<16x128xf32>,
    return
  }
  func.func @transform_0(%arg0: i32, %arg1: i32) -> (i32, i32) {
    %c0_i32 = arith.constant 0 : i32
    %c0_i32_0 = arith.constant 0 : i32
    return %arg1, %c0_i32 : i32, i32
  }
  func.func @transform_1(%arg0: i32, %arg1: i32) -> (i32, i32) {
    %c0_i32 = arith.constant 0 : i32
    %c0_i32_0 = arith.constant 0 : i32
    return %c0_i32, %arg0 : i32, i32
  }
  func.func @transform_2(%arg0: i32, %arg1: i32) -> (i32, i32) {
    %c0_i32 = arith.constant 0 : i32
    %c0_i32_0 = arith.constant 0 : i32
    return %c0_i32, %arg0 : i32, i32
  }
  func.func @transform_3(%arg0: i32, %arg1: i32) -> (i32, i32) {
    %c0_i32 = arith.constant 0 : i32
    return %arg1, %arg0 : i32, i32
  }
}

</mosaic_0001>

<bundles_post_ra>
// kernel: tpu_custom_call.1
= control target key start
LH: loop header
LB: loop body
LE: loop exit
PB: predicated region body
PF: predicated region fallthrough
CT: control target
= control target key end

     0   :  { %8 = vsyncpa [#allocation3], 0  ;;  %s362_s0 = inlined_call_operand.hbm [shape: f32[16,64], index: 0, kind: input, shape index: {}]   ;;  %s363_s1 = inlined_call_operand.hbm [shape: f32[64,128], index: 1, kind: input, shape index: {}]   ;;  %s364_s2 = inlined_call_operand.vmem [shape: f32[1,128], index: 2, kind: input, shape index: {}]   ;;  %s365_s3 = inlined_call_operand.hbm [shape: f32[16,128], index: 3, kind: output, shape index: {}]  }
   0x1   :  { %9 = vsyncpa [#allocation6], 0 }
   0x2   :  { %10 = vsyncpa [#allocation4], 0  ;;  %s287_s12 = smov [#allocation2]   ;;  %s215_s16 = scalar_lea.hbm %s362_s0, 256 }
   0x3   :  { %s16_s13 = sshll.u32 %s287_s12, 4  ;;  %p216_p0 = scmp.ne.s32.totalorder %s362_s0, %s215_s16  ;;  %s17_s13 = int_to_ptr.vmem [resolvable:$true] %s16_s13 }
   0x4   :  { %p219_p1 = scmp.lt.u32.totalorder %s215_s16, %s362_s0 }
   0x6   :  { %p221_p2 = pnand %p219_p1, %p216_p0 }
   0x8   :  { %224 = shalt.err (!%p221_p2)
}
   0x9   :  { %s225_s21 = scalar_lea.vmem %s17_s13, 256  ;;  %p230_p4 = scmp.lt.s32.totalorder %s17_s13, %s17_s13 }
   0xa   :  { %p226_p3 = scmp.ne.s32.totalorder %s17_s13, %s225_s21  ;;  %p231_p5 = scmp.lt.s32.totalorder %s225_s21, %s225_s21 }
   0xc   :  { %p232_p6 = por %p231_p5, %p230_p4 }
   0xe   :  { %p233_p7 = pnand %p232_p6, %p226_p3 }
  0x10   :  { %236 = shalt.err (!%p233_p7)
}
  0x11   :  { %s288_s22 = smov 128   ;;  %s289_s23 = smov 8  }
  0x12   :  { %22 = dma.hbm_to_vmem [thread:$0]  %s362_s0, 256, %s17_s13, [#allocation3], %s288_s22, %s288_s22, %s289_s23  }
  0x13   :  { %s290_s26 = smov [#allocation5]   ;;  %s237_s30 = scalar_lea.hbm %s363_s1, 1024 }
  0x14   :  { %s28_s27 = sshll.u32 %s290_s26, 4  ;;  %p238_p8 = scmp.ne.s32.totalorder %s363_s1, %s237_s30  ;;  %s29_s27 = int_to_ptr.vmem [resolvable:$true] %s28_s27 }
  0x15   :  { %p241_p9 = scmp.lt.u32.totalorder %s237_s30, %s363_s1 }
  0x17   :  { %p243_p10 = pnand %p241_p9, %p238_p8 }
  0x19   :  { %246 = shalt.err (!%p243_p10)
}
  0x1a   :  { %s247_s8 = scalar_lea.vmem %s29_s27, 1024  ;;  %p252_p12 = scmp.lt.s32.totalorder %s29_s27, %s29_s27 }
  0x1b   :  { %p248_p11 = scmp.ne.s32.totalorder %s29_s27, %s247_s8  ;;  %p253_p13 = scmp.lt.s32.totalorder %s247_s8, %s247_s8 }
  0x1d   :  { %p254_p0 = por %p253_p13, %p252_p12 }
  0x1f   :  { %p255_p1 = pnand %p254_p0, %p248_p11 }
  0x21   :  { %258 = shalt.err (!%p255_p1)
}
  0x22   :  { %34 = dma.hbm_to_vmem [thread:$0]  %s363_s1, 1024, %s29_s27, [#allocation6], %s288_s22, %s288_s22, %s289_s23  }
  0x23   :  { %281 = dma.done.wait [#allocation3], 256  }
  0x24   :  { %282 = vsyncadd [#allocation3], 4294967040 }
  0x25   :  { %283 = dma.done.wait [#allocation6], 1024  }
  0x26   :  { %284 = vsyncadd [#allocation6], 4294966272  ;;  %v45_v0 = vld [vmem:[#allocation5] sm:$0xff]  ;;  %v46_v1 = vld [vmem:[#allocation5 + $0x8] sm:$0xff]  ;;  %vm60_vm0 = vcmask 523264   ;;  %s291_s11 = smov [#allocation7]  }
  0x27   :  { %v47_v2 = vld [vmem:[#allocation5 + $0x10] sm:$0xff]  ;;  %v194_v3 = vpack.c.bf16 %v46_v1, %v45_v0  ;;  %v48_v4 = vld [vmem:[#allocation5 + $0x18] sm:$0xff]  ;;  %v49_v6 = vld [vmem:[#allocation5 + $0x20] sm:$0xff]  ;;  %s149_s12 = sshll.u32 %s291_s11, 4  ;;  %s150_s12 = int_to_ptr.vmem [resolvable:$true] %s149_s12 }
  0x28   :  { %v198_v5 = vpack.c.bf16 %v48_v4, %v47_v2  ;;  %v50_v7 = vld [vmem:[#allocation5 + $0x28] sm:$0xff]  ;;  %v43_v8 = vld [vmem:[#allocation2] sm:$0xff]  ;;  %v52_v11 = vld [vmem:[#allocation5 + $0x38] sm:$0xff]  ;;  %s259_s13 = scalar_lea.vmem %s150_s12, 256  ;;  %p264_p3 = scmp.lt.s32.totalorder %s150_s12, %s150_s12 }
  0x29   :  { %195 = vmatprep.subr.bf16.mxu0 %v194_v3  ;;  %191 = vmatprep.mubr.msk.f32.mxu0 %vm60_vm0, %v43_v8  ;;  %v202_v9 = vpack.c.bf16 %v50_v7, %v49_v6  ;;  %v51_v10 = vld [vmem:[#allocation5 + $0x30] sm:$0xff]  ;;  %v44_v13 = vld [vmem:[#allocation2 + $0x8] sm:$0xff]  ;;  %p260_p2 = scmp.ne.s32.totalorder %s150_s12, %s259_s13  ;;  %p265_p4 = scmp.lt.s32.totalorder %s259_s13, %s259_s13 }
  0x2a   :  { %197 = vmatpush3.bf16.msra.mxu0 %v194_v3  ;;  %v206_v12 = vpack.c.bf16 %v52_v11, %v51_v10  ;;  %v162_v14 = vld [vmem:[%s364_s2] ss:$0 sm:$0xff] }
  0x2b   :  { %199 = vmatprep.subr.bf16.mxu0 %v198_v5  ;;  %p266_p5 = por %p265_p4, %p264_p3 }
  0x2d   :  { %p267_p6 = pnand %p266_p5, %p260_p2 }
  0x2e   :  { %201 = vmatpush3.bf16.msra.mxu0 %v198_v5 }
  0x2f   :  { %203 = vmatprep.subr.bf16.mxu0 %v202_v9 }
  0x32   :  { %205 = vmatpush3.bf16.msra.mxu0 %v202_v9 }
  0x33   :  { %207 = vmatprep.subr.bf16.mxu0 %v206_v12 }
  0x36   :  { %209 = vmatpush3.bf16.msra.mxu0 %v206_v12 }
  0x39   :  { %192 = vmatmul.mubr.msk.f32.vlgmr.msra.gmra.mrb[0].mxu0 %vm60_vm0, %v44_v13 }
 0x10c   :  { %v193_v15 = vpop.f32.mrb[0].mxu0 }
 0x10d   :  { %v139_v16 = vadd.f32 %v193_v15, %v162_v14  ;;  %v133_v17 = vpop.f32.mrb[1].mxu0 }
 0x10e   :  { %v134_v18 = vadd.f32 %v162_v14, %v133_v17 }
 0x10f   :  { %143 = vst [vmem:[#allocation7 + $0x8] sm:$0xff] %v139_v16 }
 0x110   :  { %142 = vst [vmem:[#allocation7] sm:$0xff] %v134_v18 }
 0x111   :  { %270 = shalt.err (!%p267_p6)
}
 0x112   :  { %s271_s2 = scalar_lea.hbm %s365_s3, 256 }
 0x113   :  { %p272_p7 = scmp.ne.s32.totalorder %s365_s3, %s271_s2  ;;  %p275_p8 = scmp.lt.u32.totalorder %s271_s2, %s365_s3 }
 0x115   :  { %p277_p9 = pnand %p275_p8, %p272_p7 }
 0x117   :  { %280 = shalt.err (!%p277_p9)
}
 0x118   :  { %155 = dma.vmem_to_hbm [thread:$0]  %s150_s12, 256, %s365_s3, [#allocation4], %s288_s22, %s288_s22, %s289_s23  }
 0x119   :  { %285 = dma.done.wait [#allocation4], 256  }
 0x11a   :  { %286 = vsyncadd [#allocation4], 4294967040 }
 0x11b   :  { %159 = vsyncpa [#allocation3], 1 }
 0x11c   :  { %160 = vsyncpa [#allocation6], 1 }
 0x11d   :  { %161 = vsyncpa [#allocation4], 1 }

</bundles_post_ra>
